<compile_context>
chip_gen: v6e
topology: v6e:2x2x1
jax: 0.10.0
libtpu: 0.0.40
codegen_flags: <defaults>
</compile_context>

<pallas_src>
import math
import functools

import jax
import jax.numpy as jnp
from jax import lax
from jax.experimental import pallas as pl
from jax.experimental.pallas import tpu as pltpu


def bert_attention_kernel(hs_ref, mask_ref,
                          wq_ref, bq_ref, wk_ref, bk_ref, wv_ref, bv_ref,
                          wo_ref, bo_ref, gamma_ref, beta_ref,
                          out_ref, k_scr, v_scr, ctx_scr,
                          *, num_heads, q_tile, ln_eps):
    sq = pl.program_id(1)

    # --- K/V projections: computed once per batch element (sq == 0), kept resident in
    #     bf16 VMEM scratch across all query tiles (sq axis is "arbitrary"). Bias-add
    #     and bf16 cast are fused so the f32 intermediates die immediately. ---
    @pl.when(sq == 0)
    def _():
        hs_full_bf = hs_ref[0].astype(jnp.bfloat16)        # (S, H)
        k_scr[...] = (jnp.dot(hs_full_bf, wk_ref[...],
                              preferred_element_type=jnp.float32)
                      + bk_ref[0]).astype(jnp.bfloat16)
        v_scr[...] = (jnp.dot(hs_full_bf, wv_ref[...],
                              preferred_element_type=jnp.float32)
                      + bv_ref[0]).astype(jnp.bfloat16)

    # --- Query rows of this tile (also the residual input), sliced from the resident
    #     full-sequence block: no separate query input stream. ---
    row0 = pl.multiple_of(sq * q_tile, q_tile)
    hs_q = hs_ref[0, pl.ds(row0, q_tile), :]               # (Tq, H) f32
    mask = mask_ref[0]                                      # (1,  S) additive key mask

    # Q projection. The 1/sqrt(head_dim) scale is pre-folded into Wq / bq.
    q_bf = (jnp.dot(hs_q.astype(jnp.bfloat16), wq_ref[...],
                    preferred_element_type=jnp.float32)
            + bq_ref[0]).astype(jnp.bfloat16)               # (Tq, H)

    H = hs_q.shape[-1]
    dh = H // num_heads

    # Per-head attention. Column block h of q/k/v IS head h; head outputs are written
    # straight into the (Tq, H) bf16 ctx scratch (no concatenate).
    for h in range(num_heads):
        lo = h * dh
        qh = q_bf[:, lo:lo + dh]                            # (Tq, dh) bf16
        kh = k_scr[:, lo:lo + dh]                           # (S,  dh) bf16
        vh = v_scr[:, lo:lo + dh]                           # (S,  dh) bf16
        # q @ k^T without an explicit transpose: contract dim 1 against dim 1.
        scores = lax.dot_general(qh, kh, (((1,), (1,)), ((), ())),
                                 preferred_element_type=jnp.float32)
        scores = scores + mask                               # (Tq, S); bcast over rows
        scores = scores - jnp.max(scores, axis=-1, keepdims=True)
        p = jnp.exp(scores)
        inv = pl.reciprocal(jnp.sum(p, axis=-1, keepdims=True), approx=True)
        # TODO(synk): attention_probs dropout omitted (identity in eval mode).
        # Normalize the (Tq, dh) context instead of the (Tq, S) probabilities.
        ctx_h = jnp.dot(p.astype(jnp.bfloat16), vh,
                        preferred_element_type=jnp.float32) * inv
        ctx_scr[:, lo:lo + dh] = ctx_h.astype(jnp.bfloat16)

    # --- BertSelfOutput: dense + residual + LayerNorm (output dropout = identity). ---
    proj = jnp.dot(ctx_scr[...], wo_ref[...],
                   preferred_element_type=jnp.float32) + bo_ref[0]
    resid = proj + hs_q
    mean = jnp.mean(resid, axis=-1, keepdims=True)
    var = jnp.mean((resid - mean) ** 2, axis=-1, keepdims=True)
    normed = (resid - mean) * lax.rsqrt(var + ln_eps)
    out_ref[0] = normed * gamma_ref[0] + beta_ref[0]


def _pick_q_tile(S, B):
    """Largest tile <= 256 that divides S; ensure >= 2 parallel grid units if B == 1."""
    if S <= 256:
        q_tile = S
    else:
        q_tile = next((c for c in (256, 128, 64, 32, 16, 8) if S % c == 0), S)
    # v7x shards "parallel" grid axes over 2 TensorCores: avoid a (1, 1) grid.
    if B == 1 and (S // q_tile) < 2 and q_tile % 2 == 0 and q_tile >= 16:
        q_tile //= 2
    return q_tile


def bert_attention(hidden_states, attention_mask, params, *, num_heads,
                   ln_eps=1e-12, q_tile=None):
    """hidden_states: (B, S, H) f32; attention_mask: (B, 1, 1, S) additive f32."""
    B, S, H = hidden_states.shape
    assert H % num_heads == 0
    dh = H // num_heads
    scale = 1.0 / math.sqrt(dh)

    if q_tile is None:
        q_tile = _pick_q_tile(S, B)
    assert S % q_tile == 0, "q_tile must divide the sequence length"
    n_q = S // q_tile

    # Additive key mask as (B, 1, S); broadcast across query rows happens in-kernel.
    mask_b1s = jnp.asarray(attention_mask, jnp.float32).reshape(B, 1, S)

    # bf16 weights for the MXU; the attention scale is folded into Wq / bq for free.
    wq = (params["wq_t"] * scale).astype(jnp.bfloat16)
    bq = params["bq"] * scale
    wk = params["wk_t"].astype(jnp.bfloat16)
    wv = params["wv_t"].astype(jnp.bfloat16)
    wo = params["wo_t"].astype(jnp.bfloat16)

    kernel = functools.partial(bert_attention_kernel, num_heads=num_heads,
                               q_tile=q_tile, ln_eps=ln_eps)

    # Constant operands: single-buffered (index_map never changes across the grid).
    mat_spec = pl.BlockSpec((H, H), lambda b, sq: (0, 0), pipeline_mode=pl.Buffered(1))
    vec_spec = pl.BlockSpec((1, H), lambda b, sq: (0, 0), pipeline_mode=pl.Buffered(1))

    # Rough per-step VMEM footprint (bytes) -> explicit scoped-VMEM limit. Capped at
    # 48 MiB so v7x (64 MiB physical per TC) keeps compiler headroom.
    f32b, bf16b = 4, 2
    est = 0
    est += 2 * S * H * f32b                    # full-sequence input block (dbl-buf)
    est += 2 * S * f32b                        # mask
    est += 4 * H * H * bf16b                   # single-buffered bf16 weights
    est += 6 * H * f32b                        # biases + LN params
    est += 2 * q_tile * H * f32b               # output block (dbl-buf)
    est += 2 * S * H * bf16b                   # persistent bf16 K/V scratch
    est += q_tile * H * bf16b                  # bf16 ctx scratch
    est += 2 * S * H * f32b                    # transient f32 K/V projection results
    est += q_tile * H * (2 * f32b + bf16b)     # q (f32 + bf16) / proj / resid temps
    est += q_tile * S * (f32b + bf16b)         # per-head scores / probs working tile
    vmem_limit = int(min(max(int(1.3 * est), 32 * 1024 * 1024), 48 * 1024 * 1024))

    return pl.pallas_call(
        kernel,
        out_shape=jax.ShapeDtypeStruct((B, S, H), jnp.float32),
        grid=(B, n_q),
        in_specs=[
            pl.BlockSpec((1, S, H), lambda b, sq: (b, 0, 0)),   # full seq (Q sliced in-kernel)
            pl.BlockSpec((1, 1, S), lambda b, sq: (b, 0, 0)),   # additive key mask
            mat_spec, vec_spec,                                 # Wq^T (scaled bf16), bq (scaled)
            mat_spec, vec_spec,                                 # Wk^T (bf16), bk
            mat_spec, vec_spec,                                 # Wv^T (bf16), bv
            mat_spec, vec_spec,                                 # Wo^T (bf16), bo
            vec_spec, vec_spec,                                 # LN gamma, beta
        ],
        out_specs=pl.BlockSpec((1, q_tile, H), lambda b, sq: (b, sq, 0)),
        scratch_shapes=[
            pltpu.VMEM((S, H), jnp.bfloat16),        # K (bf16), persists over query tiles
            pltpu.VMEM((S, H), jnp.bfloat16),        # V (bf16), persists over query tiles
            pltpu.VMEM((q_tile, H), jnp.bfloat16),   # per-tile context accumulator
        ],
        compiler_params=pltpu.CompilerParams(
            dimension_semantics=("parallel", "arbitrary"),
            vmem_limit_bytes=vmem_limit,
        ),
    )(
        hidden_states, mask_b1s,
        wq, bq,
        wk, params["bk"],
        wv, params["bv"],
        wo, params["bo"],
        params["ln_gamma"], params["ln_beta"],
    )


def init_params(key, hidden_size):
    """Deterministic synthetic parameters matching nn.Linear(H, H) x4 + LayerNorm(H)."""
    ks = jax.random.split(key, 8)
    std = 0.02

    def dense(kw, kb):
        # PyTorch nn.Linear weight is (out, in); we store it pre-transposed (in, out).
        w_t = std * jax.random.normal(kw, (hidden_size, hidden_size), jnp.float32)
        b = std * jax.random.normal(kb, (1, hidden_size), jnp.float32)
        return w_t, b

    wq_t, bq = dense(ks[0], ks[1])
    wk_t, bk = dense(ks[2], ks[3])
    wv_t, bv = dense(ks[4], ks[5])
    wo_t, bo = dense(ks[6], ks[7])
    return {
        "wq_t": wq_t, "bq": bq,
        "wk_t": wk_t, "bk": bk,
        "wv_t": wv_t, "bv": bv,
        "wo_t": wo_t, "bo": bo,
        "ln_gamma": jnp.ones((1, hidden_size), jnp.float32),
        "ln_beta": jnp.zeros((1, hidden_size), jnp.float32),
    }


if __name__ == "__main__":
    B, S, H, NH = 2, 8, 32, 4

    root = jax.random.PRNGKey(0)
    k_x, k_p = jax.random.split(root)

    hidden_states = jax.random.normal(k_x, (B, S, H), jnp.float32)

    # Padding mask: first example attends to all 8 tokens, second only to the first 6.
    lengths = jnp.array([8, 6], dtype=jnp.int32)
    valid = (jnp.arange(S)[None, :] < lengths[:, None]).astype(jnp.float32)  # (B, S)
    attention_mask = ((1.0 - valid) * -10000.0).reshape(B, 1, 1, S)

    params = init_params(k_p, H)

    out = bert_attention(hidden_states, attention_mask, params, num_heads=NH)
    jax.block_until_ready(out)
    print("KERNEL_OK")
</pallas_src>

<mosaic_0001>
module attributes {stable_mosaic.version = 11 : i64} {
  func.func @bert_attention_kernel(%arg0: i32, %arg1: i32, %arg2: memref<1x8x32xf32, #tpu.memory_space<vmem>>, %arg3: memref<1x1x8xf32, #tpu.memory_space<vmem>>, %arg4: memref<32x32xbf16, #tpu.memory_space<vmem>>, %arg5: memref<1x32xf32, #tpu.memory_space<vmem>>, %arg6: memref<32x32xbf16, #tpu.memory_space<vmem>>, %arg7: memref<1x32xf32, #tpu.memory_space<vmem>>, %arg8: memref<32x32xbf16, #tpu.memory_space<vmem>>, %arg9: memref<1x32xf32, #tpu.memory_space<vmem>>, %arg10: memref<32x32xbf16, #tpu.memory_space<vmem>>, %arg11: memref<1x32xf32, #tpu.memory_space<vmem>>, %arg12: memref<1x32xf32, #tpu.memory_space<vmem>>, %arg13: memref<1x32xf32, #tpu.memory_space<vmem>>, %arg14: memref<1x8x32xf32, #tpu.memory_space<vmem>>, %arg15: memref<8x32xbf16, #tpu.memory_space<vmem>>, %arg16: memref<8x32xbf16, #tpu.memory_space<vmem>>, %arg17: memref<8x32xbf16, #tpu.memory_space<vmem>>) attributes {dimension_semantics = [#tpu.dimension_semantics<parallel>, #tpu.dimension_semantics<arbitrary>], iteration_bounds = array<i64: 2, 1>, scalar_prefetch = 0 : i64, scratch_operands = 3 : i64, tpu.core_type = #tpu.core_type<tc>, window_params = [{transform_indices = @transform_0, window_bounds = array<i64: 1, 8, 32>}, {transform_indices = @transform_1, window_bounds = array<i64: 1, 1, 8>}, {pipeline_mode = #tpu.pipeline_mode<synchronous>, transform_indices = @transform_2, window_bounds = array<i64: 32, 32>}, {pipeline_mode = #tpu.pipeline_mode<synchronous>, transform_indices = @transform_3, window_bounds = array<i64: 1, 32>}, {pipeline_mode = #tpu.pipeline_mode<synchronous>, transform_indices = @transform_4, window_bounds = array<i64: 32, 32>}, {pipeline_mode = #tpu.pipeline_mode<synchronous>, transform_indices = @transform_5, window_bounds = array<i64: 1, 32>}, {pipeline_mode = #tpu.pipeline_mode<synchronous>, transform_indices = @transform_6, window_bounds = array<i64: 32, 32>}, {pipeline_mode = #tpu.pipeline_mode<synchronous>, transform_indices = @transform_7, window_bounds = array<i64: 1, 32>}, {pipeline_mode = #tpu.pipeline_mode<synchronous>, transform_indices = @transform_8, window_bounds = array<i64: 32, 32>}, {pipeline_mode = #tpu.pipeline_mode<synchronous>, transform_indices = @transform_9, window_bounds = array<i64: 1, 32>}, {pipeline_mode = #tpu.pipeline_mode<synchronous>, transform_indices = @transform_10, window_bounds = array<i64: 1, 32>}, {pipeline_mode = #tpu.pipeline_mode<synchronous>, transform_indices = @transform_11, window_bounds = array<i64: 1, 32>}, {transform_indices = @transform_12, window_bounds = array<i64: 1, 8, 32>}]} {
    %c0_i32 = arith.constant 0 : i32
    %0 = arith.cmpi eq, %arg1, %c0_i32 : i32
    %1 = arith.extui %0 : i1 to i32
    %c0_i32_0 = arith.constant 0 : i32
    %2 = arith.cmpi ne, %1, %c0_i32_0 : i32
    scf.if %2 {
      %c0_65 = arith.constant 0 : index
      %c0_66 = arith.constant 0 : index
      %c0_67 = arith.constant 0 : index
      %139 = vector.load %arg2[%c0_65, %c0_66, %c0_67] : memref<1x8x32xf32, #tpu.memory_space<vmem>>, vector<1x8x32xf32>
      %140 = vector.shape_cast %139 : vector<1x8x32xf32> to vector<8x32xf32>
      %141 = arith.truncf %140 : vector<8x32xf32> to vector<8x32xbf16>
      %c0_68 = arith.constant 0 : index
      %c0_69 = arith.constant 0 : index
      %142 = vector.load %arg6[%c0_68, %c0_69] : memref<32x32xbf16, #tpu.memory_space<vmem>>, vector<32x32xbf16>
      %cst_70 = arith.constant dense<0.000000e+00> : vector<8x32xf32>
      %143 = tpu.matmul %141, %142, %cst_70 {dimension_numbers = #tpu.dot_dimension_numbers<[1], [0], [0], [1], [0, 0, 1, 1], [], []>} : vector<8x32xbf16>, vector<32x32xbf16>, vector<8x32xf32> -> vector<8x32xf32>
      %c0_71 = arith.constant 0 : index
      %c0_72 = arith.constant 0 : index
      %144 = vector.load %arg7[%c0_71, %c0_72] : memref<1x32xf32, #tpu.memory_space<vmem>>, vector<1x32xf32>
      %145 = vector.shape_cast %144 : vector<1x32xf32> to vector<32xf32>
      %146 = vector.shape_cast %145 : vector<32xf32> to vector<1x32xf32>
      %147 = vector.broadcast %146 : vector<1x32xf32> to vector<8x32xf32>
      %148 = arith.addf %143, %147 : vector<8x32xf32>
      %149 = arith.truncf %148 : vector<8x32xf32> to vector<8x32xbf16>
      %c0_73 = arith.constant 0 : index
      %c0_74 = arith.constant 0 : index
      %150 = vector.load %arg15[%c0_73, %c0_74] : memref<8x32xbf16, #tpu.memory_space<vmem>>, vector<8x32xbf16>
      tpu.vector_store %arg15[%c0_73, %c0_74], %149 {strides = array<i32>} : memref<8x32xbf16, #tpu.memory_space<vmem>>, vector<8x32xbf16>,
      %c0_75 = arith.constant 0 : index
      %c0_76 = arith.constant 0 : index
      %151 = vector.load %arg8[%c0_75, %c0_76] : memref<32x32xbf16, #tpu.memory_space<vmem>>, vector<32x32xbf16>
      %cst_77 = arith.constant dense<0.000000e+00> : vector<8x32xf32>
      %152 = tpu.matmul %141, %151, %cst_77 {dimension_numbers = #tpu.dot_dimension_numbers<[1], [0], [0], [1], [0, 0, 1, 1], [], []>} : vector<8x32xbf16>, vector<32x32xbf16>, vector<8x32xf32> -> vector<8x32xf32>
      %c0_78 = arith.constant 0 : index
      %c0_79 = arith.constant 0 : index
      %153 = vector.load %arg9[%c0_78, %c0_79] : memref<1x32xf32, #tpu.memory_space<vmem>>, vector<1x32xf32>
      %154 = vector.shape_cast %153 : vector<1x32xf32> to vector<32xf32>
      %155 = vector.shape_cast %154 : vector<32xf32> to vector<1x32xf32>
      %156 = vector.broadcast %155 : vector<1x32xf32> to vector<8x32xf32>
      %157 = arith.addf %152, %156 : vector<8x32xf32>
      %158 = arith.truncf %157 : vector<8x32xf32> to vector<8x32xbf16>
      %c0_80 = arith.constant 0 : index
      %c0_81 = arith.constant 0 : index
      %159 = vector.load %arg16[%c0_80, %c0_81] : memref<8x32xbf16, #tpu.memory_space<vmem>>, vector<8x32xbf16>
      tpu.vector_store %arg16[%c0_80, %c0_81], %158 {strides = array<i32>} : memref<8x32xbf16, #tpu.memory_space<vmem>>, vector<8x32xbf16>,
    } else {
    }
    %c8_i32 = arith.constant 8 : i32
    %3 = arith.muli %arg1, %c8_i32 : i32
    %4 = tpu.assume_multiple %3, 8 : i32
    %c0 = arith.constant 0 : index
    %5 = arith.index_cast %4 : i32 to index
    %c0_1 = arith.constant 0 : index
    %6 = vector.load %arg2[%c0, %5, %c0_1] : memref<1x8x32xf32, #tpu.memory_space<vmem>>, vector<1x8x32xf32>
    %7 = vector.shape_cast %6 : vector<1x8x32xf32> to vector<8x32xf32>
    %c0_2 = arith.constant 0 : index
    %c0_3 = arith.constant 0 : index
    %c0_4 = arith.constant 0 : index
    %8 = vector.load %arg3[%c0_2, %c0_3, %c0_4] : memref<1x1x8xf32, #tpu.memory_space<vmem>>, vector<1x1x8xf32>
    %9 = vector.shape_cast %8 : vector<1x1x8xf32> to vector<1x8xf32>
    %10 = arith.truncf %7 : vector<8x32xf32> to vector<8x32xbf16>
    %c0_5 = arith.constant 0 : index
    %c0_6 = arith.constant 0 : index
    %11 = vector.load %arg4[%c0_5, %c0_6] : memref<32x32xbf16, #tpu.memory_space<vmem>>, vector<32x32xbf16>
    %cst = arith.constant dense<0.000000e+00> : vector<8x32xf32>
    %12 = tpu.matmul %10, %11, %cst {dimension_numbers = #tpu.dot_dimension_numbers<[1], [0], [0], [1], [0, 0, 1, 1], [], []>} : vector<8x32xbf16>, vector<32x32xbf16>, vector<8x32xf32> -> vector<8x32xf32>
    %c0_7 = arith.constant 0 : index
    %c0_8 = arith.constant 0 : index
    %13 = vector.load %arg5[%c0_7, %c0_8] : memref<1x32xf32, #tpu.memory_space<vmem>>, vector<1x32xf32>
    %14 = vector.shape_cast %13 : vector<1x32xf32> to vector<32xf32>
    %15 = vector.shape_cast %14 : vector<32xf32> to vector<1x32xf32>
    %16 = vector.broadcast %15 : vector<1x32xf32> to vector<8x32xf32>
    %17 = arith.addf %12, %16 : vector<8x32xf32>
    %18 = arith.truncf %17 : vector<8x32xf32> to vector<8x32xbf16>
    %19 = vector.extract_strided_slice %18 {offsets = [0, 0], sizes = [8, 8], strides = [1, 1]} : vector<8x32xbf16> to vector<8x8xbf16>
    %c0_9 = arith.constant 0 : index
    %c0_10 = arith.constant 0 : index
    %20 = vector.load %arg15[%c0_9, %c0_10] : memref<8x32xbf16, #tpu.memory_space<vmem>>, vector<8x8xbf16>
    %c0_11 = arith.constant 0 : index
    %c0_12 = arith.constant 0 : index
    %21 = vector.load %arg16[%c0_11, %c0_12] : memref<8x32xbf16, #tpu.memory_space<vmem>>, vector<8x8xbf16>
    %cst_13 = arith.constant dense<0.000000e+00> : vector<8x8xf32>
    %22 = tpu.matmul %19, %20, %cst_13 {dimension_numbers = #tpu.dot_dimension_numbers<[1], [1], [0], [0], [0, 0, 1, 0], [], []>} : vector<8x8xbf16>, vector<8x8xbf16>, vector<8x8xf32> -> vector<8x8xf32>
    %23 = vector.broadcast %9 : vector<1x8xf32> to vector<8x8xf32>
    %24 = arith.addf %22, %23 : vector<8x8xf32>
    %cst_14 = arith.constant dense<0xFF800000> : vector<8xf32>
    %25 = vector.multi_reduction <maximumf>, %24, %cst_14 [1] : vector<8x8xf32> to vector<8xf32>
    %26 = vector.shape_cast %25 : vector<8xf32> to vector<8x1xf32>
    %27 = vector.broadcast %26 : vector<8x1xf32> to vector<8x8xf32>
    %28 = arith.subf %24, %27 : vector<8x8xf32>
    %29 = math.exp %28 : vector<8x8xf32>
    %cst_15 = arith.constant dense<0.000000e+00> : vector<8xf32>
    %30 = vector.multi_reduction <add>, %29, %cst_15 [1] : vector<8x8xf32> to vector<8xf32>
    %31 = vector.shape_cast %30 : vector<8xf32> to vector<8x1xf32>
    %32 = tpu.reciprocal %31 {approx = true} : vector<8x1xf32> -> vector<8x1xf32>
    %33 = arith.truncf %29 : vector<8x8xf32> to vector<8x8xbf16>
    %cst_16 = arith.constant dense<0.000000e+00> : vector<8x8xf32>
    %34 = tpu.matmul %33, %21, %cst_16 {dimension_numbers = #tpu.dot_dimension_numbers<[1], [0], [0], [1], [0, 0, 1, 1], [], []>} : vector<8x8xbf16>, vector<8x8xbf16>, vector<8x8xf32> -> vector<8x8xf32>
    %35 = vector.broadcast %32 : vector<8x1xf32> to vector<8x8xf32>
    %36 = arith.mulf %34, %35 : vector<8x8xf32>
    %37 = arith.truncf %36 : vector<8x8xf32> to vector<8x8xbf16>
    %c0_17 = arith.constant 0 : index
    %c0_18 = arith.constant 0 : index
    %38 = vector.load %arg17[%c0_17, %c0_18] : memref<8x32xbf16, #tpu.memory_space<vmem>>, vector<8x8xbf16>
    tpu.vector_store %arg17[%c0_17, %c0_18], %37 {strides = array<i32>} : memref<8x32xbf16, #tpu.memory_space<vmem>>, vector<8x8xbf16>,
    %39 = vector.extract_strided_slice %18 {offsets = [0, 8], sizes = [8, 8], strides = [1, 1]} : vector<8x32xbf16> to vector<8x8xbf16>
    %c0_19 = arith.constant 0 : index
    %c8 = arith.constant 8 : index
    %40 = vector.load %arg15[%c0_19, %c8] : memref<8x32xbf16, #tpu.memory_space<vmem>>, vector<8x8xbf16>
    %c0_20 = arith.constant 0 : index
    %c8_21 = arith.constant 8 : index
    %41 = vector.load %arg16[%c0_20, %c8_21] : memref<8x32xbf16, #tpu.memory_space<vmem>>, vector<8x8xbf16>
    %cst_22 = arith.constant dense<0.000000e+00> : vector<8x8xf32>
    %42 = tpu.matmul %39, %40, %cst_22 {dimension_numbers = #tpu.dot_dimension_numbers<[1], [1], [0], [0], [0, 0, 1, 0], [], []>} : vector<8x8xbf16>, vector<8x8xbf16>, vector<8x8xf32> -> vector<8x8xf32>
    %43 = vector.broadcast %9 : vector<1x8xf32> to vector<8x8xf32>
    %44 = arith.addf %42, %43 : vector<8x8xf32>
    %cst_23 = arith.constant dense<0xFF800000> : vector<8xf32>
    %45 = vector.multi_reduction <maximumf>, %44, %cst_23 [1] : vector<8x8xf32> to vector<8xf32>
    %46 = vector.shape_cast %45 : vector<8xf32> to vector<8x1xf32>
    %47 = vector.broadcast %46 : vector<8x1xf32> to vector<8x8xf32>
    %48 = arith.subf %44, %47 : vector<8x8xf32>
    %49 = math.exp %48 : vector<8x8xf32>
    %cst_24 = arith.constant dense<0.000000e+00> : vector<8xf32>
    %50 = vector.multi_reduction <add>, %49, %cst_24 [1] : vector<8x8xf32> to vector<8xf32>
    %51 = vector.shape_cast %50 : vector<8xf32> to vector<8x1xf32>
    %52 = tpu.reciprocal %51 {approx = true} : vector<8x1xf32> -> vector<8x1xf32>
    %53 = arith.truncf %49 : vector<8x8xf32> to vector<8x8xbf16>
    %cst_25 = arith.constant dense<0.000000e+00> : vector<8x8xf32>
    %54 = tpu.matmul %53, %41, %cst_25 {dimension_numbers = #tpu.dot_dimension_numbers<[1], [0], [0], [1], [0, 0, 1, 1], [], []>} : vector<8x8xbf16>, vector<8x8xbf16>, vector<8x8xf32> -> vector<8x8xf32>
    %55 = vector.broadcast %52 : vector<8x1xf32> to vector<8x8xf32>
    %56 = arith.mulf %54, %55 : vector<8x8xf32>
    %57 = arith.truncf %56 : vector<8x8xf32> to vector<8x8xbf16>
    %c0_26 = arith.constant 0 : index
    %c8_27 = arith.constant 8 : index
    %58 = vector.load %arg17[%c0_26, %c8_27] : memref<8x32xbf16, #tpu.memory_space<vmem>>, vector<8x8xbf16>
    tpu.vector_store %arg17[%c0_26, %c8_27], %57 {strides = array<i32>} : memref<8x32xbf16, #tpu.memory_space<vmem>>, vector<8x8xbf16>,
    %59 = vector.extract_strided_slice %18 {offsets = [0, 16], sizes = [8, 8], strides = [1, 1]} : vector<8x32xbf16> to vector<8x8xbf16>
    %c0_28 = arith.constant 0 : index
    %c16 = arith.constant 16 : index
    %60 = vector.load %arg15[%c0_28, %c16] : memref<8x32xbf16, #tpu.memory_space<vmem>>, vector<8x8xbf16>
    %c0_29 = arith.constant 0 : index
    %c16_30 = arith.constant 16 : index
    %61 = vector.load %arg16[%c0_29, %c16_30] : memref<8x32xbf16, #tpu.memory_space<vmem>>, vector<8x8xbf16>
    %cst_31 = arith.constant dense<0.000000e+00> : vector<8x8xf32>
    %62 = tpu.matmul %59, %60, %cst_31 {dimension_numbers = #tpu.dot_dimension_numbers<[1], [1], [0], [0], [0, 0, 1, 0], [], []>} : vector<8x8xbf16>, vector<8x8xbf16>, vector<8x8xf32> -> vector<8x8xf32>
    %63 = vector.broadcast %9 : vector<1x8xf32> to vector<8x8xf32>
    %64 = arith.addf %62, %63 : vector<8x8xf32>
    %cst_32 = arith.constant dense<0xFF800000> : vector<8xf32>
    %65 = vector.multi_reduction <maximumf>, %64, %cst_32 [1] : vector<8x8xf32> to vector<8xf32>
    %66 = vector.shape_cast %65 : vector<8xf32> to vector<8x1xf32>
    %67 = vector.broadcast %66 : vector<8x1xf32> to vector<8x8xf32>
    %68 = arith.subf %64, %67 : vector<8x8xf32>
    %69 = math.exp %68 : vector<8x8xf32>
    %cst_33 = arith.constant dense<0.000000e+00> : vector<8xf32>
    %70 = vector.multi_reduction <add>, %69, %cst_33 [1] : vector<8x8xf32> to vector<8xf32>
    %71 = vector.shape_cast %70 : vector<8xf32> to vector<8x1xf32>
    %72 = tpu.reciprocal %71 {approx = true} : vector<8x1xf32> -> vector<8x1xf32>
    %73 = arith.truncf %69 : vector<8x8xf32> to vector<8x8xbf16>
    %cst_34 = arith.constant dense<0.000000e+00> : vector<8x8xf32>
    %74 = tpu.matmul %73, %61, %cst_34 {dimension_numbers = #tpu.dot_dimension_numbers<[1], [0], [0], [1], [0, 0, 1, 1], [], []>} : vector<8x8xbf16>, vector<8x8xbf16>, vector<8x8xf32> -> vector<8x8xf32>
    %75 = vector.broadcast %72 : vector<8x1xf32> to vector<8x8xf32>
    %76 = arith.mulf %74, %75 : vector<8x8xf32>
    %77 = arith.truncf %76 : vector<8x8xf32> to vector<8x8xbf16>
    %c0_35 = arith.constant 0 : index
    %c16_36 = arith.constant 16 : index
    %78 = vector.load %arg17[%c0_35, %c16_36] : memref<8x32xbf16, #tpu.memory_space<vmem>>, vector<8x8xbf16>
    tpu.vector_store %arg17[%c0_35, %c16_36], %77 {strides = array<i32>} : memref<8x32xbf16, #tpu.memory_space<vmem>>, vector<8x8xbf16>,
    %79 = vector.extract_strided_slice %18 {offsets = [0, 24], sizes = [8, 8], strides = [1, 1]} : vector<8x32xbf16> to vector<8x8xbf16>
    %c0_37 = arith.constant 0 : index
    %c24 = arith.constant 24 : index
    %80 = vector.load %arg15[%c0_37, %c24] : memref<8x32xbf16, #tpu.memory_space<vmem>>, vector<8x8xbf16>
    %c0_38 = arith.constant 0 : index
    %c24_39 = arith.constant 24 : index
    %81 = vector.load %arg16[%c0_38, %c24_39] : memref<8x32xbf16, #tpu.memory_space<vmem>>, vector<8x8xbf16>
    %cst_40 = arith.constant dense<0.000000e+00> : vector<8x8xf32>
    %82 = tpu.matmul %79, %80, %cst_40 {dimension_numbers = #tpu.dot_dimension_numbers<[1], [1], [0], [0], [0, 0, 1, 0], [], []>} : vector<8x8xbf16>, vector<8x8xbf16>, vector<8x8xf32> -> vector<8x8xf32>
    %83 = vector.broadcast %9 : vector<1x8xf32> to vector<8x8xf32>
    %84 = arith.addf %82, %83 : vector<8x8xf32>
    %cst_41 = arith.constant dense<0xFF800000> : vector<8xf32>
    %85 = vector.multi_reduction <maximumf>, %84, %cst_41 [1] : vector<8x8xf32> to vector<8xf32>
    %86 = vector.shape_cast %85 : vector<8xf32> to vector<8x1xf32>
    %87 = vector.broadcast %86 : vector<8x1xf32> to vector<8x8xf32>
    %88 = arith.subf %84, %87 : vector<8x8xf32>
    %89 = math.exp %88 : vector<8x8xf32>
    %cst_42 = arith.constant dense<0.000000e+00> : vector<8xf32>
    %90 = vector.multi_reduction <add>, %89, %cst_42 [1] : vector<8x8xf32> to vector<8xf32>
    %91 = vector.shape_cast %90 : vector<8xf32> to vector<8x1xf32>
    %92 = tpu.reciprocal %91 {approx = true} : vector<8x1xf32> -> vector<8x1xf32>
    %93 = arith.truncf %89 : vector<8x8xf32> to vector<8x8xbf16>
    %cst_43 = arith.constant dense<0.000000e+00> : vector<8x8xf32>
    %94 = tpu.matmul %93, %81, %cst_43 {dimension_numbers = #tpu.dot_dimension_numbers<[1], [0], [0], [1], [0, 0, 1, 1], [], []>} : vector<8x8xbf16>, vector<8x8xbf16>, vector<8x8xf32> -> vector<8x8xf32>
    %95 = vector.broadcast %92 : vector<8x1xf32> to vector<8x8xf32>
    %96 = arith.mulf %94, %95 : vector<8x8xf32>
    %97 = arith.truncf %96 : vector<8x8xf32> to vector<8x8xbf16>
    %c0_44 = arith.constant 0 : index
    %c24_45 = arith.constant 24 : index
    %98 = vector.load %arg17[%c0_44, %c24_45] : memref<8x32xbf16, #tpu.memory_space<vmem>>, vector<8x8xbf16>
    tpu.vector_store %arg17[%c0_44, %c24_45], %97 {strides = array<i32>} : memref<8x32xbf16, #tpu.memory_space<vmem>>, vector<8x8xbf16>,
    %c0_46 = arith.constant 0 : index
    %c0_47 = arith.constant 0 : index
    %99 = vector.load %arg17[%c0_46, %c0_47] : memref<8x32xbf16, #tpu.memory_space<vmem>>, vector<8x32xbf16>
    %c0_48 = arith.constant 0 : index
    %c0_49 = arith.constant 0 : index
    %100 = vector.load %arg10[%c0_48, %c0_49] : memref<32x32xbf16, #tpu.memory_space<vmem>>, vector<32x32xbf16>
    %cst_50 = arith.constant dense<0.000000e+00> : vector<8x32xf32>
    %101 = tpu.matmul %99, %100, %cst_50 {dimension_numbers = #tpu.dot_dimension_numbers<[1], [0], [0], [1], [0, 0, 1, 1], [], []>} : vector<8x32xbf16>, vector<32x32xbf16>, vector<8x32xf32> -> vector<8x32xf32>
    %c0_51 = arith.constant 0 : index
    %c0_52 = arith.constant 0 : index
    %102 = vector.load %arg11[%c0_51, %c0_52] : memref<1x32xf32, #tpu.memory_space<vmem>>, vector<1x32xf32>
    %103 = vector.shape_cast %102 : vector<1x32xf32> to vector<32xf32>
    %104 = vector.shape_cast %103 : vector<32xf32> to vector<1x32xf32>
    %105 = vector.broadcast %104 : vector<1x32xf32> to vector<8x32xf32>
    %106 = arith.addf %101, %105 : vector<8x32xf32>
    %107 = arith.addf %106, %7 : vector<8x32xf32>
    %cst_53 = arith.constant dense<0.000000e+00> : vector<8xf32>
    %108 = vector.multi_reduction <add>, %107, %cst_53 [1] : vector<8x32xf32> to vector<8xf32>
    %109 = vector.shape_cast %108 : vector<8xf32> to vector<8x1xf32>
    %cst_54 = arith.constant 3.200000e+01 : f32
    %110 = vector.broadcast %cst_54 : f32 to vector<8x1xf32>
    %111 = arith.divf %109, %110 : vector<8x1xf32>
    %112 = vector.broadcast %111 : vector<8x1xf32> to vector<8x32xf32>
    %113 = arith.subf %107, %112 : vector<8x32xf32>
    %114 = arith.mulf %113, %113 : vector<8x32xf32>
    %cst_55 = arith.constant dense<0.000000e+00> : vector<8xf32>
    %115 = vector.multi_reduction <add>, %114, %cst_55 [1] : vector<8x32xf32> to vector<8xf32>
    %116 = vector.shape_cast %115 : vector<8xf32> to vector<8x1xf32>
    %cst_56 = arith.constant 3.200000e+01 : f32
    %117 = vector.broadcast %cst_56 : f32 to vector<8x1xf32>
    %118 = arith.divf %116, %117 : vector<8x1xf32>
    %119 = vector.broadcast %111 : vector<8x1xf32> to vector<8x32xf32>
    %120 = arith.subf %107, %119 : vector<8x32xf32>
    %cst_57 = arith.constant 9.99999996E-13 : f32
    %121 = vector.broadcast %cst_57 : f32 to vector<8x1xf32>
    %122 = arith.addf %118, %121 : vector<8x1xf32>
    %123 = math.rsqrt %122 : vector<8x1xf32>
    %124 = vector.broadcast %123 : vector<8x1xf32> to vector<8x32xf32>
    %125 = arith.mulf %120, %124 : vector<8x32xf32>
    %c0_58 = arith.constant 0 : index
    %c0_59 = arith.constant 0 : index
    %126 = vector.load %arg12[%c0_58, %c0_59] : memref<1x32xf32, #tpu.memory_space<vmem>>, vector<1x32xf32>
    %127 = vector.shape_cast %126 : vector<1x32xf32> to vector<32xf32>
    %128 = vector.shape_cast %127 : vector<32xf32> to vector<1x32xf32>
    %129 = vector.broadcast %128 : vector<1x32xf32> to vector<8x32xf32>
    %130 = arith.mulf %125, %129 : vector<8x32xf32>
    %c0_60 = arith.constant 0 : index
    %c0_61 = arith.constant 0 : index
    %131 = vector.load %arg13[%c0_60, %c0_61] : memref<1x32xf32, #tpu.memory_space<vmem>>, vector<1x32xf32>
    %132 = vector.shape_cast %131 : vector<1x32xf32> to vector<32xf32>
    %133 = vector.shape_cast %132 : vector<32xf32> to vector<1x32xf32>
    %134 = vector.broadcast %133 : vector<1x32xf32> to vector<8x32xf32>
    %135 = arith.addf %130, %134 : vector<8x32xf32>
    %c0_62 = arith.constant 0 : index
    %c0_63 = arith.constant 0 : index
    %c0_64 = arith.constant 0 : index
    %136 = vector.load %arg14[%c0_62, %c0_63, %c0_64] : memref<1x8x32xf32, #tpu.memory_space<vmem>>, vector<1x8x32xf32>
    %137 = vector.shape_cast %136 : vector<1x8x32xf32> to vector<8x32xf32>
    %138 = vector.shape_cast %135 : vector<8x32xf32> to vector<1x8x32xf32>
    tpu.vector_store %arg14[%c0_62, %c0_63, %c0_64], %138 {strides = array<i32>} : memref<1x8x32xf32, #tpu.memory_space<vmem>>, vector<1x8x32xf32>,
    return
  }
  func.func @transform_0(%arg0: i32, %arg1: i32) -> (i32, i32, i32) {
    %c0_i32 = arith.constant 0 : i32
    %c0_i32_0 = arith.constant 0 : i32
    %c0_i32_1 = arith.constant 0 : i32
    return %arg0, %c0_i32, %c0_i32_0 : i32, i32, i32
  }
  func.func @transform_1(%arg0: i32, %arg1: i32) -> (i32, i32, i32) {
    %c0_i32 = arith.constant 0 : i32
    %c0_i32_0 = arith.constant 0 : i32
    %c0_i32_1 = arith.constant 0 : i32
    return %arg0, %c0_i32, %c0_i32_0 : i32, i32, i32
  }
  func.func @transform_2(%arg0: i32, %arg1: i32) -> (i32, i32) {
    %c0_i32 = arith.constant 0 : i32
    %c0_i32_0 = arith.constant 0 : i32
    %c0_i32_1 = arith.constant 0 : i32
    return %c0_i32, %c0_i32_0 : i32, i32
  }
  func.func @transform_3(%arg0: i32, %arg1: i32) -> (i32, i32) {
    %c0_i32 = arith.constant 0 : i32
    %c0_i32_0 = arith.constant 0 : i32
    %c0_i32_1 = arith.constant 0 : i32
    return %c0_i32, %c0_i32_0 : i32, i32
  }
  func.func @transform_4(%arg0: i32, %arg1: i32) -> (i32, i32) {
    %c0_i32 = arith.constant 0 : i32
    %c0_i32_0 = arith.constant 0 : i32
    %c0_i32_1 = arith.constant 0 : i32
    return %c0_i32, %c0_i32_0 : i32, i32
  }
  func.func @transform_5(%arg0: i32, %arg1: i32) -> (i32, i32) {
    %c0_i32 = arith.constant 0 : i32
    %c0_i32_0 = arith.constant 0 : i32
    %c0_i32_1 = arith.constant 0 : i32
    return %c0_i32, %c0_i32_0 : i32, i32
  }
  func.func @transform_6(%arg0: i32, %arg1: i32) -> (i32, i32) {
    %c0_i32 = arith.constant 0 : i32
    %c0_i32_0 = arith.constant 0 : i32
    %c0_i32_1 = arith.constant 0 : i32
    return %c0_i32, %c0_i32_0 : i32, i32
  }
  func.func @transform_7(%arg0: i32, %arg1: i32) -> (i32, i32) {
    %c0_i32 = arith.constant 0 : i32
    %c0_i32_0 = arith.constant 0 : i32
    %c0_i32_1 = arith.constant 0 : i32
    return %c0_i32, %c0_i32_0 : i32, i32
  }
  func.func @transform_8(%arg0: i32, %arg1: i32) -> (i32, i32) {
    %c0_i32 = arith.constant 0 : i32
    %c0_i32_0 = arith.constant 0 : i32
    %c0_i32_1 = arith.constant 0 : i32
    return %c0_i32, %c0_i32_0 : i32, i32
  }
  func.func @transform_9(%arg0: i32, %arg1: i32) -> (i32, i32) {
    %c0_i32 = arith.constant 0 : i32
    %c0_i32_0 = arith.constant 0 : i32
    %c0_i32_1 = arith.constant 0 : i32
    return %c0_i32, %c0_i32_0 : i32, i32
  }
  func.func @transform_10(%arg0: i32, %arg1: i32) -> (i32, i32) {
    %c0_i32 = arith.constant 0 : i32
    %c0_i32_0 = arith.constant 0 : i32
    %c0_i32_1 = arith.constant 0 : i32
    return %c0_i32, %c0_i32_0 : i32, i32
  }
  func.func @transform_11(%arg0: i32, %arg1: i32) -> (i32, i32) {
    %c0_i32 = arith.constant 0 : i32
    %c0_i32_0 = arith.constant 0 : i32
    %c0_i32_1 = arith.constant 0 : i32
    return %c0_i32, %c0_i32_0 : i32, i32
  }
  func.func @transform_12(%arg0: i32, %arg1: i32) -> (i32, i32, i32) {
    %c0_i32 = arith.constant 0 : i32
    %c0_i32_0 = arith.constant 0 : i32
    return %arg0, %arg1, %c0_i32 : i32, i32, i32
  }
}

</mosaic_0001>

<bundles_post_ra>
// kernel: tpu_custom_call.1
= control target key start
LH: loop header
LB: loop body
LE: loop exit
PB: predicated region body
PF: predicated region fallthrough
CT: control target
= control target key end

     0   :  { %s2499_s0 = inlined_call_operand.hbm [shape: f32[2,8,32], index: 0, kind: input, shape index: {}]   ;;  %s2500_s1 = inlined_call_operand.hbm [shape: f32[2,1,8], index: 1, kind: input, shape index: {}]   ;;  %s2501_s2 = inlined_call_operand.hbm [shape: bf16[32,32], index: 2, kind: input, shape index: {}]   ;;  %s2502_s3 = inlined_call_operand.vmem [shape: f32[1,32], index: 3, kind: input, shape index: {}]   ;;  %s2503_s4 = inlined_call_operand.hbm [shape: bf16[32,32], index: 4, kind: input, shape index: {}]   ;;  %s2504_s5 = inlined_call_operand.vmem [shape: f32[1,32], index: 5, kind: input, shape index: {}]   ;;  %s2505_s6 = inlined_call_operand.hbm [shape: bf16[32,32], index: 6, kind: input, shape index: {}]   ;;  %s2506_s7 = inlined_call_operand.vmem [shape: f32[1,32], index: 7, kind: input, shape index: {}]   ;;  %s2507_s8 = inlined_call_operand.hbm [shape: bf16[32,32], index: 8, kind: input, shape index: {}]   ;;  %s2508_s9 = inlined_call_operand.vmem [shape: f32[1,32], index: 9, kind: input, shape index: {}]   ;;  %s2509_s10 = inlined_call_operand.vmem [shape: f32[1,32], index: 10, kind: input, shape index: {}]   ;;  %s2510_s11 = inlined_call_operand.vmem [shape: f32[1,32], index: 11, kind: input, shape index: {}]   ;;  %s2511_s12 = inlined_call_operand.hbm [shape: f32[2,8,32], index: 12, kind: output, shape index: {}]  }
   0x1   :  { %2519 = sst [smem:[#allocation29_spill]] %s2499_s0 }
   0x2   :  { %2520 = sst [smem:[#allocation30_spill]] %s2501_s2 }
   0x3   :  { %2521 = sst [smem:[#allocation31_spill]] %s2503_s4 }
   0x4   :  { %2522 = sst [smem:[#allocation32_spill]] %s2505_s6 }
   0x5   :  { %2523 = sst [smem:[#allocation33_spill]] %s2507_s8 }
   0x6   :  { %2524 = sst [smem:[#allocation34_spill]] %s2511_s12 }
   0x7   :  { %17 = vsyncpa [#allocation6], 0 }
   0x8   :  { %19 = vsyncpa [#allocation6 + $0x1], 0 }
   0x9   :  { %20 = vsyncpa [#allocation9], 0 }
   0xa   :  { %22 = vsyncpa [#allocation9 + $0x1], 0 }
   0xb   :  { %23 = vsyncpa [#allocation12], 0 }
   0xc   :  { %24 = vsyncpa [#allocation15], 0 }
   0xd   :  { %25 = vsyncpa [#allocation7], 0 }
   0xe   :  { %27 = vsyncpa [#allocation7 + $0x1], 0  ;;  %s2161_s21 = smov 0   ;;  %s2163_s22 = smov 0  }
   0xf   :  { %s2165_s23 = smov 0   ;;  %s2167_s24 = smov 0  }
  0x10   :  { %s2169_s25 = smov 0   ;;  %s2171_s26 = smov 0  }
  0x11 LB: > { %2525 = sst [smem:[#allocation23_spill]] %s2057_s21  ;;  %s2192_s27 = sadd.s32 4294967295, %s2077_s26   ;;  %s2077_s26 = sphi %s2171_s26, %s33_s26   ;;  %s2073_s25 = sphi %s2169_s25, %s2554_s25   ;;  %s2069_s24 = sphi %s2167_s24, %s2553_s24   ;;  %s2065_s23 = sphi %s2165_s23, %s2549_s23   ;;  %s2061_s22 = sphi %s2163_s22, %s2552_s22   ;;  %s2057_s21 = sphi %s2161_s21, %s2551_s21  }
  0x12   : > { %2526 = sst [smem:[#allocation24_spill]] %s2065_s23  ;;  %p1504_p0 = scmp.ge.s32.totalorder %s2077_s26, 1 }
  0x13   : > { %2527 = sst [smem:[#allocation25_spill]] %s2077_s26  ;;  %p66_p1 = scmp.eq.s32.totalorder %s2192_s27, 0 }
  0x14   : > { %p340_p2 = scmp.lt.s32.totalorder %s2077_s26, 3  ;;  %s2079_s29 = smov [#allocation10]  }
  0x15   : > { %s352_s30 = sshll.u32 %s2079_s29, 4  ;;  %s2080_s14 = smov [#allocation11]   ;;  %s353_s30 = int_to_ptr.vmem [resolvable:$true] %s352_s30 }
  0x16   : > { %p2197_p3 = pnand %p1504_p0, %p340_p2  ;;  %s368_s15 = sshll.u32 %s2080_s14, 4  ;;  %s369_s15 = int_to_ptr.vmem [resolvable:$true] %s368_s15 }
  0x17   : > { %s2081_s16 = smov [#allocation13]   ;;  %s1832_s18 = scalar_lea.vmem %s353_s30, 256 }
  0x18   : > { %p1693_p4 = pneg %p2197_p3  ;;  %s384_s17 = sshll.u32 %s2081_s16, 4  ;;  %s385_s17 = int_to_ptr.vmem [resolvable:$true] %s384_s17 }
  0x19   : > { %p1833_p8 = scmp.ne.s32.totalorder %s353_s30, %s1832_s18  ;;  %p1840_p11 = scmp.lt.s32.totalorder %s353_s30, %s353_s30 }
  0x1a   : > { %p2206_p6 = pnand %p1693_p4, %p66_p1  ;;  %p1841_p12 = scmp.lt.s32.totalorder %s1832_s18, %s1832_s18 }
  0x1c   : > { %p1823_p7 = pneg %p2206_p6  ;;  %p1842_p13 = por %p1841_p12, %p1840_p11 }
  0x1e   : > { %p1835_p9 = pnand %p1833_p8, %p1823_p7 }
  0x20   : > { %p1836_p10 = pneg %p1835_p9 }
  0x22   : > { %p1843_p0 = pnand %p1842_p13, %p1836_p10 }
  0x24   : > { %1846 = shalt.err (!%p1843_p0)
}
  0x25   : > { %s2082_s19 = smov 64   ;;  %s2083_s20 = smov 4  }
  0x26   : > { %s2530_s2 = sld [smem:[#allocation30_spill]]  ;;  %s1858_s16 = scalar_lea.vmem %s369_s15, 256 }
  0x27   : > { %p1859_p2 = scmp.ne.s32.totalorder %s369_s15, %s1858_s16  ;;  %p1866_p9 = scmp.lt.s32.totalorder %s369_s15, %s369_s15 }
  0x28   : > { %p1867_p10 = scmp.lt.s32.totalorder %s1858_s16, %s1858_s16 }
  0x29   : > { %p1861_p4 = pnand %p1859_p2, %p1823_p7 }
  0x2a   : > { %p1868_p11 = por %p1867_p10, %p1866_p9 }
  0x2b   : > { %p1862_p8 = pneg %p1861_p4 }
  0x2c   : > { %1696 = dma.hbm_to_vmem [thread:$0]  (!%p2206_p6), %s2530_s2, 256, %s353_s30, [#allocation9], %s2082_s19, %s2082_s19, %s2083_s20  }
  0x2d   : > { %p1869_p12 = pnand %p1868_p11, %p1862_p8 }
  0x2f   : > { %1872 = shalt.err (!%p1869_p12)
}
  0x30   : > { %s2531_s4 = sld [smem:[#allocation31_spill]]  ;;  %s1884_s30 = scalar_lea.vmem %s385_s17, 256 }
  0x31   : > { %p1885_p13 = scmp.ne.s32.totalorder %s385_s17, %s1884_s30  ;;  %p1892_p4 = scmp.lt.s32.totalorder %s385_s17, %s385_s17 }
  0x32   : > { %p1893_p8 = scmp.lt.s32.totalorder %s1884_s30, %s1884_s30 }
  0x33   : > { %p1887_p0 = pnand %p1885_p13, %p1823_p7 }
  0x34   : > { %p1894_p9 = por %p1893_p8, %p1892_p4 }
  0x35   : > { %p1888_p2 = pneg %p1887_p0 }
  0x36   : > { %1699 = dma.hbm_to_vmem [thread:$0]  (!%p2206_p6), %s2531_s4, 256, %s369_s15, [#allocation12], %s2082_s19, %s2082_s19, %s2083_s20  }
  0x37   : > { %p1895_p10 = pnand %p1894_p9, %p1888_p2 }
  0x39   : > { %1898 = shalt.err (!%p1895_p10)
}
  0x3a   : > { %s2532_s6 = sld [smem:[#allocation32_spill]]  ;;  %s2084_s15 = smov [#allocation14]  }
  0x3b   : > { %s400_s14 = sshll.u32 %s2084_s15, 4  ;;  %s401_s14 = int_to_ptr.vmem [resolvable:$true] %s400_s14 }
  0x3c   : > { %s1910_s16 = scalar_lea.vmem %s401_s14, 256  ;;  %p1918_p0 = scmp.lt.s32.totalorder %s401_s14, %s401_s14 }
  0x3d   : > { %p1911_p11 = scmp.ne.s32.totalorder %s401_s14, %s1910_s16  ;;  %p1919_p2 = scmp.lt.s32.totalorder %s1910_s16, %s1910_s16 }
  0x3f   : > { %p1913_p12 = pnand %p1911_p11, %p1823_p7  ;;  %p1920_p4 = por %p1919_p2, %p1918_p0 }
  0x40   : > { %1702 = dma.hbm_to_vmem [thread:$0]  (!%p2206_p6), %s2532_s6, 256, %s385_s17, [#allocation12], %s2082_s19, %s2082_s19, %s2083_s20  }
  0x41   : > { %p1914_p13 = pneg %p1913_p12 }
  0x43   : > { %p1921_p8 = pnand %p1920_p4, %p1914_p13 }
  0x45   : > { %1924 = shalt.err (!%p1921_p8)
}
  0x46   : > { %s2533_s8 = sld [smem:[#allocation33_spill]]  ;;  %s1503_s13 = sadd.s32 4294967294, %s2077_s26  }
  0x47   : > { %s45_s30 = sadd.s32 1, %s2073_s25  ;;  %s52_s12 = sadd.s32 1, %s2065_s23 }
  0x48   : > { %p47_p7 = scmp.ge.s32.totalorder %s45_s30, 2  ;;  %p59_p9 = scmp.ne.s32.totalorder %s2065_s23, %s2061_s22 }
  0x49   : > { %p60_p10 = scmp.eq.s32.totalorder %s2077_s26, 0  ;;  %p65_p12 = scmp.ne.s32.totalorder %s2061_s22, %s2057_s21 }
  0x4a   : > { %s2556_s30 = smov (%p47_p7, %s45_s30), 0  ;;  %p333_p4 = scmp.eq.s32.totalorder %s1503_s13, 1 }
  0x4b   : > { %2534 = sst [smem:[#allocation26_spill]] %s2556_s30  ;;  %p2264_p11 = por %p60_p10, %p59_p9 }
  0x4c   : > { %1705 = dma.hbm_to_vmem [thread:$0]  (!%p2206_p6), %s2533_s8, 256, %s401_s14, [#allocation15], %s2082_s19, %s2082_s19, %s2083_s20  }
  0x4d   : > { %s49_s19 = ssub.s32 %s2073_s25, %s2556_s30  ;;  %p327_p6 = scmp.eq.s32.totalorder %s2192_s27, 1 }
  0x4e   : > { %p50_p13 = scmp.eq.s32.totalorder %s49_s19, 0  ;;  %p2275_p0 = por %p66_p1, %p65_p12 }
  0x4f   : > { %p2279_p2 = por %p327_p6, %p59_p9  ;;  %p2286_p8 = por %p333_p4, %p65_p12 }
  0x50   : > { %s2284_s14 = scalar_select %p50_p13, %s2065_s23, %s52_s12  }
  0x51   : > { %s2539_s16 = scalar_select %p2286_p8, 1, 0 }
  0x52   : > { %2538 = sst [smem:[#allocation27_spill]] %s2284_s14  ;;  %p1721_p7 = scmp.lt.s32.totalorder %s2077_s26, 2 }
  0x53   : > { %2540 = sst [smem:[#allocation28_spill]] %s2539_s16  ;;  %s423_s17 = sand.u32 1, %s2065_s23  }
  0x54   : > { %s1511_s18 = sshll.u32 %s2073_s25, 7  ;;  %s1510_s19 = sshll.u32 %s423_s17, 3 }
  0x55   : > { %s2541_s0 = sld [smem:[#allocation29_spill]]  ;;  %s427_s8 = scalar_lea.vmem [#allocation5], %s1510_s19 }
  0x56   : > { %s434_s30 = sshll.u32 %s427_s8, 4  ;;  %p2298_p9 = pnand %p1721_p7, %p2264_p11  ;;  %s435_s30 = int_to_ptr.vmem [resolvable:$true] %s434_s30 }
  0x57   : > { %s441_s13 = sand.u32 1, %s2077_s26   ;;  %s424_s12 = scalar_lea.sflag [#allocation6], %s423_s17 }
  0x58   : > { %p1927_p10 = pneg %p2298_p9  ;;  %s1938_s14 = scalar_lea.vmem %s435_s30, 128 }
  0x59   : > { %p1939_p12 = scmp.ne.s32.totalorder %s435_s30, %s1938_s14  ;;  %s2085_s2 = smov [#allocation5]  }
  0x5a   : > { %s1943_s4 = sshll.u32 %s2085_s2, 4  ;;  %s1944_s4 = int_to_ptr.vmem [resolvable:$false] %s1943_s4 }
  0x5b   : > { %s432_s6 = scalar_lea.hbm %s2541_s0, %s1511_s18  ;;  %p1941_p6 = pnand %p1939_p12, %p1927_p10 }
  0x5c   : > { %s1945_s8 = scalar_lea.vmem %s1944_s4, 256  ;;  %p1946_p11 = scmp.lt.s32.totalorder %s435_s30, %s1944_s4 }
  0x5d   : > { %p1942_p13 = pneg %p1941_p6  ;;  %p1947_p4 = scmp.lt.s32.totalorder %s1945_s8, %s1938_s14 }
  0x5f   : > { %p1948_p7 = por %p1947_p4, %p1946_p11 }
  0x61   : > { %p1949_p5 = pnand %p1948_p7, %p1942_p13 }
  0x63   : > { %1952 = shalt.err (!%p1949_p5)
}
  0x64   : > { %1709 = dma.hbm_to_vmem [thread:$0]  (!%p2298_p9), %s432_s6, 128, %s435_s30, %s424_s12  }
  0x65   : > { %s1512_s29 = sshll.u32 %s2073_s25, 4  ;;  %s444_s23 = scalar_lea.vmem [#allocation8], %s423_s17 }
  0x66   : > { %s449_s0 = scalar_lea.hbm %s2500_s1, %s1512_s29  ;;  %s451_s26 = sshll.u32 %s444_s23, 4  ;;  %s452_s26 = int_to_ptr.vmem [resolvable:$true] %s451_s26 }
  0x67   : > { %s442_s2 = scalar_lea.sflag [#allocation9], %s441_s13  ;;  %s1966_s16 = scalar_lea.vmem %s452_s26, 16 }
  0x68   : > { %p1967_p12 = scmp.ne.s32.totalorder %s452_s26, %s1966_s16  ;;  %s2086_s14 = smov [#allocation8]  }
  0x69   : > { %s1971_s4 = sshll.u32 %s2086_s14, 4  ;;  %s1972_s4 = int_to_ptr.vmem [resolvable:$false] %s1971_s4 }
  0x6a   : > { %p1969_p6 = pnand %p1967_p12, %p1927_p10  ;;  %s1973_s8 = scalar_lea.vmem %s1972_s4, 32 }
  0x6b   : > { %p1974_p13 = scmp.lt.s32.totalorder %s452_s26, %s1972_s4  ;;  %p1975_p11 = scmp.lt.s32.totalorder %s1973_s8, %s1966_s16 }
  0x6c   : > { %p1970_p5 = pneg %p1969_p6 }
  0x6d   : > { %p1976_p4 = por %p1975_p11, %p1974_p13 }
  0x6f   : > { %p1977_p7 = pnand %p1976_p4, %p1970_p5 }
  0x71   : > { %1980 = shalt.err (!%p1977_p7)
}
  0x72   : > { %1712 = dma.hbm_to_vmem [thread:$0]  (!%p2298_p9), %s449_s0, 16, %s452_s26, %s442_s2  }
  0x73   : > { %460 = sbr.rel (%p2197_p3) target bundleno = 1678 (0x68e), region = 68  ;;  %s2322_s6 = sand.u32 (!%p2197_p3), 1, %s2061_s22  }
  0x74   : > { %s1514_s23 = sshll.u32 (!%p2197_p3), %s2322_s6, 3  ;;  %s463_s30 = scalar_lea.sflag (!%p2197_p3), [#allocation6], %s2322_s6 }
  0x75   : > { %s466_s16 = scalar_lea.vmem (!%p2197_p3), [#allocation5], %s1514_s23 }
  0x78   : > { %2032 = dma.done.wait (%p2275_p0), %s463_s30, 128  }
  0x79   : > { %2034 = vsyncadd (%p2275_p0), %s463_s30, 4294967168  ;;  %s471_s0 = sand.u32 1, %s2192_s27   ;;  %s474_s26 = scalar_lea.vmem [#allocation8], %s2322_s6 }
  0x7a   : > { %s472_s21 = scalar_lea.sflag [#allocation9], %s471_s0 }
  0x7b   : > { %2036 = dma.done.wait (%p2275_p0), %s472_s21, 16  }
  0x7c   : > { %2038 = vsyncadd (%p2275_p0), %s472_s21, 4294967280 }
  0x7d   : > { %2040 = dma.done.wait (%p66_p1), [#allocation9], 256  }
  0x7e   : > { %2042 = vsyncadd (%p66_p1), [#allocation9], 4294967040 }
  0x7f   : > { %2044 = dma.done.wait (%p66_p1), [#allocation12], 512  }
  0x80   : > { %2046 = vsyncadd (%p66_p1), [#allocation12], 4294966784 }
  0x81   : > { %2048 = dma.done.wait (%p66_p1), [#allocation15], 256  }
  0x82   : > { %2050 = vsyncadd (%p66_p1), [#allocation15], 4294967040  ;;  %v2087_v0 = vmov 0.0   ;;  %vm2088_vm0 = vmmov 0   ;;  %v1789_v1 = vld [vmem:[#allocation11 + $0x8] sm:$0xff]   ;;  %v1790_v2 = vld [vmem:[#allocation11] sm:$0xff]  }
  0x83   : > { %1591 = vmatprep.subr.bf16.mxu0 %v2087_v0  ;;  %1595 = vmatprep.mubr.msk.bf16.mxu0 %vm2088_vm0, %v2087_v0  ;;  %v2356_v3 = vld [vmem:[%s466_s16] sm:$0xff]  ;;  %vm565_vm1 = vcmask 261120   ;;  %v1792_v6 = vld [vmem:[#allocation10] sm:$0xff]   ;;  %vm610_vm2 = vcmask 257024   ;;  %vm758_vm3 = vcmask 64512   ;;  %s2089_s13 = smov 112  }
  0x84   : > { %1599 = vmatprep.subr.bf16.mxu1 %v2087_v0  ;;  %1603 = vmatprep.mubr.msk.bf16.mxu1 %vm2088_vm0, %v2087_v0  ;;  %v1791_v4 = vld [vmem:[#allocation10 + $0x8] sm:$0xff]   ;;  %v541_v5 = vpack.c.bf16 %v2356_v3, %v2356_v3  ;;  %v1794_v8 = vld [vmem:[#allocation13] sm:$0xff]   ;;  %s2090_s12 = smov 120   ;;  %s2091_s29 = smov 104   ;;  %vm819_vm4 = vcmask 1043456   ;;  %vm865_vm5 = vcmask 60416  }
  0x85   : > { %1592 = vmatpush3.bf16.msra.mxu0 %v1789_v1  ;;  %v1793_v7 = vld [vmem:[#allocation13 + $0x8] sm:$0xff]   ;;  %v1520_v9 = vld [vmem:[%s2504_s5] ss:$0 sm:$0xff]  ;;  %s2092_s2 = smov 8   ;;  %s2093_s14 = smov 16   ;;  %vm993_vm6 = vcmask 126016  }
  0x86   : > { %1593 = vmatprep.subr.bf16.mxu0 %v2087_v0  ;;  %1600 = vmatpush3.bf16.msra.mxu1 %v1793_v7  ;;  %v1528_v16 = vld [vmem:[%s2502_s3] ss:$0 sm:$0xff]  ;;  %s2094_s4 = smov 24   ;;  %vm1120_vm7 = vcmask 191616   ;;  %vm1247_vm8 = vcmask 257216   ;;  %s1557_s27 = sshll.u32 %s2069_s24, 7 }
  0x87   : > { %1601 = vmatprep.subr.bf16.mxu1 %v2087_v0  ;;  %v1524_v28 = vld [vmem:[%s2506_s7] ss:$0 sm:$0xff]  ;;  %s534_s28 = scalar_lea.vmem [#allocation16], %s1514_s23  ;;  %s1349_s18 = scalar_lea.sflag [#allocation7], %s2322_s6 }
  0x88   : > { %v1532_v46 = vld [vmem:[%s474_s26] ss:$0 sm:$0xff]  ;;  %s1363_s20 = sshll.u32 %s534_s28, 4  ;;  %s1364_s20 = int_to_ptr.vmem [resolvable:$true] %s1363_s20 }
  0x89   : > { %1594 = vmatpush3.bf16.msra.mxu0 %v1790_v2  ;;  %s1981_s19 = scalar_lea.vmem %s1364_s20, 128 }
  0x8a   : > { %1607 = vmatprep.subr.bf16.mxu0 %v2087_v0  ;;  %1602 = vmatpush3.bf16.msra.mxu1 %v1794_v8  ;;  %p1982_p1 = scmp.ne.s32.totalorder %s1364_s20, %s1981_s19 }
  0x8b   : > { %1615 = vmatprep.subr.bf16.mxu1 %v2087_v0 }
  0x8c   : > { %1596 = vmatmul.mubr.msk.bf16.vlgmr.msra.gmra.mxu0 %vm565_vm1, %v541_v5  ;;  %p1983_p3 = pnand %p1982_p1, %p2279_p2 }
  0x8d   : > { %1608 = vmatpush3.bf16.msra.mxu0 %v1791_v4  ;;  %1611 = vmatprep.mubr.msk.bf16.mxu0 %vm2088_vm0, %v2087_v0 }
  0x8e   : > { %1609 = vmatprep.subr.bf16.mxu0 %v2087_v0  ;;  %1604 = vmatmul.mubr.msk.bf16.vlgmr.msra.gmra.mxu1 %vm565_vm1, %v541_v5  ;;  %p1984_p0 = pneg %p1983_p3 }
  0x8f   : > { %1617 = vmatprep.mubr.msk.bf16.mxu1 %vm2088_vm0, %v2087_v0 }
  0x91   : > { %1610 = vmatpush3.bf16.msra.mxu0 %v1792_v6 }
  0x92   : > { %1621 = vmatprep.subr.bf16.mxu0 %v2087_v0 }
  0x94   : > { %1612 = vmatmul.mubr.msk.bf16.vlgmr.msra.gmra.mxu0 %vm565_vm1, %v541_v5 }
  0x95   : > { %1623 = vmatprep.mubr.msk.bf16.mxu0 %vm2088_vm0, %v2087_v0 }
 0x14c   : > { %v603_v10 = vpop.f32.mrf.mxu0 }
 0x14d   : > { %v604_v11 = vadd.f32 %v1520_v9, %v603_v10 }
 0x14e   : > { %v1597_v12 = vpop.f32.mrf.mxu0  ;;  %v669_v29 = vpop.f32.mrf.mxu1 }
 0x14f   : > { %v609_v13 = vpack.c.bf16 %v604_v11, %v604_v11  ;;  %v670_v30 = vadd.f32 %v1524_v28, %v669_v29 }
 0x150   : > { %v606_v14 = vpop.f32.mrf.mxu0  ;;  %v1605_v31 = vpop.f32.mrf.mxu1 }
 0x151   : > { %611 = vst.msk [vmem:[#allocation2] sm:$0xf] %vm610_vm2, %v609_v13  ;;  %v675_v32 = vpack.c.bf16 %v670_v30, %v670_v30 }
 0x152   : > { %v1598_v15 = vpop.f32.mrf.mxu0  ;;  %v672_v33 = vpop.f32.mrf.mxu1 }
 0x153   : > { %676 = vst.msk [vmem:[#allocation3] sm:$0xf] %vm610_vm2, %v675_v32 }
 0x154   : > { %v743_v17 = vpop.f32.mrf.mxu0  ;;  %v1606_v34 = vpop.f32.mrf.mxu1 }
 0x155   : > { %v744_v18 = vadd.f32 %v1528_v16, %v743_v17 }
 0x156   : > { %v1613_v19 = vpop.f32.mrf.mxu0 }
 0x157   : > { %v749_v25 = vpack.c.bf16 %v744_v18, %v744_v18 }
 0x158   : > { %v750_v20 = vld [vmem:[#allocation2] sm:$0xf]  ;;  %v746_v22 = vpop.f32.mrf.mxu0 }
 0x159   : > { %v1795_v21 = vld [vmem:[#allocation2] ss:$0 sps:$4 sm:$0xff]   ;;  %v763_v23 = vsel %vm758_vm3, %v750_v20, 0 }
 0x15a   : > { %v1796_v24 = vld [vmem:[#allocation2] ss:$0 sps:$4 sm:$0xff]   ;;  %1616 = vmatpush3.bf16.xpose.msra.mxu1 %v763_v23  ;;  %1002 = vrot.lane.b32.xlu1 %v1795_v21, %s2089_s13  ;;  %v1614_v26 = vpop.f32.mrf.mxu0  ;;  %v751_v35 = vld [vmem:[#allocation3] sm:$0xf] }
 0x15b   : > { %875 = vrot.lane.b32.xlu0 %v1796_v24, %s2090_s12  ;;  %1627 = vmatprep.subr.bf16.mxu1 %v2087_v0  ;;  %v1797_v27 = vld [vmem:[#allocation2] ss:$0 sps:$4 sm:$0xff]   ;;  %v821_v36 = vsel %vm819_vm4, %v751_v35, 0  ;;  %v1798_v7 = vld [vmem:[#allocation3] ss:$0 sps:$4 sm:$0xff]  }
 0x15c   : > { %1622 = vmatpush3.bf16.msra.mxu0 %v821_v36  ;;  %v1799_v10 = vld [vmem:[#allocation3] ss:$0 sps:$4 sm:$0xff]  }
 0x15d   : > { %1633 = vmatprep.subr.bf16.mxu0 %v2087_v0  ;;  %v1800_v14 = vld [vmem:[#allocation3] ss:$0 sps:$4 sm:$0xff]  }
 0x15e   : > { %997 = vrot.lane.b32.xlu1 %v749_v25, %s2089_s13 }
 0x15f   : > { %870 = vrot.lane.b32.xlu0 %v749_v25, %s2090_s12 }
 0x161   : > { %1618 = vmatmul.mubr.msk.bf16.vlgmr.msra.gmra.mxu1 %vm758_vm3, %v749_v25 }
 0x162   : > { %1124 = vrot.lane.b32.xlu1 %v749_v25, %s2091_s29  ;;  %1629 = vmatprep.mubr.msk.bf16.mxu1 %vm2088_vm0, %v2087_v0 }
 0x163   : > { %1129 = vrot.lane.b32.xlu0 %v1797_v27, %s2091_s29 }
 0x1cc   : > { %v1003_v39 = vpop.permute.xlu1 %1002 }
 0x1cd   : > { %v876_v37 = vpop.permute.xlu0 %875  ;;  %v1008_v41 = vsel %vm758_vm3, %v1003_v39, 0 }
 0x1ce   : > { %v881_v38 = vsel %vm758_vm3, %v876_v37, 0 }
 0x1cf   : > { %1628 = vmatpush3.bf16.xpose.msra.mxu1 %v881_v38 }
 0x1d0   : > { %1639 = vmatprep.subr.bf16.mxu1 %v2087_v0  ;;  %v998_v43 = vpop.permute.xlu1 %997 }
 0x1d1   : > { %v871_v40 = vpop.permute.xlu0 %870 }
 0x1d4   : > { %v1125_v45 = vpop.permute.xlu1 %1124 }
 0x1d5   : > { %v1130_v42 = vpop.permute.xlu0 %1129 }
 0x1d6   : > { %1630 = vmatmul.mubr.msk.bf16.vlgmr.msra.gmra.mxu1 %vm758_vm3, %v871_v40  ;;  %v1135_v44 = vsel %vm758_vm3, %v1130_v42, 0 }
 0x1d7   : > { %1640 = vmatpush3.bf16.xpose.msra.mxu1 %v1008_v41  ;;  %1641 = vmatprep.mubr.msk.bf16.mxu1 %vm2088_vm0, %v2087_v0 }
 0x1d8   : > { %1651 = vmatprep.subr.bf16.mxu1 %v2087_v0 }
 0x1de   : > { %1642 = vmatmul.mubr.msk.bf16.vlgmr.msra.gmra.mxu1 %vm758_vm3, %v998_v43 }
 0x1df   : > { %1652 = vmatpush3.bf16.xpose.msra.mxu1 %v1135_v44  ;;  %1653 = vmatprep.mubr.msk.bf16.mxu1 %vm2088_vm0, %v2087_v0 }
 0x1e0   : > { %1663 = vmatprep.subr.bf16.mxu1 %v2087_v0 }
 0x1e6   : > { %1654 = vmatmul.mubr.msk.bf16.vlgmr.msra.gmra.mxu1 %vm758_vm3, %v1125_v45 }
 0x1e7   : > { %1667 = vmatprep.mubr.msk.bf16.mxu1 %vm2088_vm0, %v2087_v0 }
 0x221   : > { %v799_v47 = vpop.f32.mrf.mxu1 }
 0x222   : > { %v800_v48 = vadd.f32 %v1532_v46, %v799_v47 }
 0x223   : > { %v1619_v49 = vpop.f32.mrf.mxu1 }
 0x224   : > { %v805_v50 = vsel %vm758_vm3, %v800_v48, -inf }
 0x225   : > { %806 = vmax.xlane.f32.xlu0 %v805_v50  ;;  %v802_v51 = vpop.f32.mrf.mxu1 }
 0x227   : > { %v1620_v52 = vpop.f32.mrf.mxu1 }
 0x296   : > { %v917_v53 = vpop.f32.mrf.mxu1 }
 0x297   : > { %v918_v54 = vadd.f32 %v1532_v46, %v917_v53 }
 0x298   : > { %v1631_v55 = vpop.f32.mrf.mxu1 }
 0x299   : > { %v923_v56 = vsel %vm758_vm3, %v918_v54, -inf }
 0x29a   : > { %924 = vmax.xlane.f32.xlu1 %v923_v56  ;;  %v920_v57 = vpop.f32.mrf.mxu1 }
 0x29c   : > { %v1632_v58 = vpop.f32.mrf.mxu1 }
 0x29e   : > { %v1044_v59 = vpop.f32.mrf.mxu1 }
 0x29f   : > { %v1045_v60 = vadd.f32 %v1532_v46, %v1044_v59 }
 0x2a0   : > { %v1643_v61 = vpop.f32.mrf.mxu1 }
 0x2a1   : > { %v1050_v62 = vsel %vm758_vm3, %v1045_v60, -inf }
 0x2a2   : > { %1051 = vmax.xlane.f32.xlu0 %v1050_v62  ;;  %v1047_v63 = vpop.f32.mrf.mxu1  ;;  %v1801_v62 = vld [vmem:[#allocation14 + $0x8] sm:$0xff]  }
 0x2a3   : > { %1664 = vmatpush3.bf16.msra.mxu1 %v1801_v62 }
 0x2a4   : > { %v1644_v1 = vpop.f32.mrf.mxu1  ;;  %1665 = vmatprep.subr.bf16.mxu1 %v2087_v0 }
 0x2a6   : > { %v1171_v2 = vpop.f32.mrf.mxu1 }
 0x2a7   : > { %v1172_v4 = vadd.f32 %v1532_v46, %v1171_v2  ;;  %v1802_v2 = vld [vmem:[#allocation14] sm:$0xff]  }
 0x2a8   : > { %v1655_v5 = vpop.f32.mrf.mxu1  ;;  %1666 = vmatpush3.bf16.msra.mxu1 %v1802_v2 }
 0x2a9   : > { %v1177_v6 = vsel %vm758_vm3, %v1172_v4, -inf }
 0x2aa   : > { %1178 = vmax.xlane.f32.xlu0 %v1177_v6  ;;  %v1174_v8 = vpop.f32.mrf.mxu1 }
 0x2ab   : > { %937 = vrot.lane.b32.xlu1 %v1798_v7, %s2090_s12  ;;  %s2543_s12 = sld [smem:[#allocation34_spill]] }
 0x2ac   : > { %v1656_v9 = vpop.f32.mrf.mxu1 }
 0x2ae   : > { %v807_v11 = vpop.xlane.xlu0 %806 }
 0x2af   : > { %v808_v12 = vsub.f32 %v800_v48, %v807_v11  ;;  %1191 = vrot.lane.b32.xlu1 %v1799_v10, %s2091_s29 }
 0x2b1   : > { %v809_v13 = vmul.f32 1.442695, %v808_v12  ;;  %s1361_s29 = scalar_lea.hbm %s2543_s12, %s1557_s27 }
 0x2b3   : > { %1803 = vpow2.f32 %v809_v13 }
 0x2c0   : > { %v1804_v15 = vpop.eup %1803  ;;  %1064 = vrot.lane.b32.xlu0 %v1800_v14, %s2089_s13 }
 0x2c1   : > { %v815_v16 = vpack.c.bf16 %v1804_v15, %v1804_v15  ;;  %v811_v33 = vsel %vm758_vm3, %v1804_v15, 0.0 }
 0x2c3   : > { %1624 = vmatmul.mubr.msk.bf16.vlgmr.msra.gmra.mxu0 %vm758_vm3, %v815_v16 }
 0x2c4   : > { %1635 = vmatprep.mubr.msk.bf16.mxu0 %vm2088_vm0, %v2087_v0 }
 0x323   : > { %v925_v17 = vpop.xlane.xlu1 %924 }
 0x324   : > { %v926_v18 = vsub.f32 %v918_v54, %v925_v17  ;;  %v1550_v17 = vld [vmem:[%s2508_s9] ss:$0 sm:$0xff] }
 0x326   : > { %v927_v19 = vmul.f32 1.442695, %v926_v18 }
 0x327   : > { %v938_v20 = vpop.permute.xlu1 %937 }
 0x328   : > { %1805 = vpow2.f32 %v927_v19  ;;  %v943_v21 = vsel %vm819_vm4, %v938_v20, 0 }
 0x329   : > { %1634 = vmatpush3.bf16.msra.mxu0 %v943_v21 }
 0x32a   : > { %1645 = vmatprep.subr.bf16.mxu0 %v2087_v0 }
 0x32b   : > { %v1052_v22 = vpop.xlane.xlu0 %1051  ;;  %v1192_v35 = vpop.permute.xlu1 %1191 }
 0x32c   : > { %v1053_v23 = vsub.f32 %v1045_v60, %v1052_v22  ;;  %v1197_v38 = vsel %vm819_vm4, %v1192_v35, 0  ;;  %v1555_v35 = vld [vmem:[%s2510_s11] ss:$0 sm:$0xff] }
 0x32e   : > { %v1054_v24 = vmul.f32 1.442695, %v1053_v23 }
 0x330   : > { %1807 = vpow2.f32 %v1054_v24 }
 0x333   : > { %v1179_v25 = vpop.xlane.xlu0 %1178 }
 0x334   : > { %v1180_v26 = vsub.f32 %v1172_v4, %v1179_v25 }
 0x335   : > { %v1806_v27 = vpop.eup %1805 }
 0x336   : > { %v1181_v28 = vmul.f32 1.442695, %v1180_v26  ;;  %v929_v29 = vsel %vm758_vm3, %v1806_v27, 0.0  ;;  %v933_v30 = vpack.c.bf16 %v1806_v27, %v1806_v27 }
 0x337   : > { %930 = vadd.xlane.f32.xlu1 %v929_v29  ;;  %v1065_v31 = vpop.permute.xlu0 %1064 }
 0x338   : > { %1809 = vpow2.f32 %v1181_v28  ;;  %v1070_v32 = vsel %vm819_vm4, %v1065_v31, 0  ;;  %1636 = vmatmul.mubr.msk.bf16.vlgmr.msra.gmra.mxu0 %vm758_vm3, %v933_v30 }
 0x339   : > { %1646 = vmatpush3.bf16.msra.mxu0 %v1070_v32  ;;  %1647 = vmatprep.mubr.msk.bf16.mxu0 %vm2088_vm0, %v2087_v0 }
 0x33a   : > { %1657 = vmatprep.subr.bf16.mxu0 %v2087_v0 }
 0x33b   : > { %812 = vadd.xlane.f32.xlu1 %v811_v33  ;;  %v1554_v33 = vld [vmem:[%s2509_s10] ss:$0 sm:$0xff] }
 0x33d   : > { %v1808_v34 = vpop.eup %1807 }
 0x33e   : > { %v1056_v36 = vsel %vm758_vm3, %v1808_v34, 0.0  ;;  %v1060_v37 = vpack.c.bf16 %v1808_v34, %v1808_v34 }
 0x33f   : > { %1057 = vadd.xlane.f32.xlu0 %v1056_v36 }
 0x340   : > { %1648 = vmatmul.mubr.msk.bf16.vlgmr.msra.gmra.mxu0 %vm758_vm3, %v1060_v37 }
 0x341   : > { %1658 = vmatpush3.bf16.msra.mxu0 %v1197_v38  ;;  %1659 = vmatprep.mubr.msk.bf16.mxu0 %vm2088_vm0, %v2087_v0 }
 0x345   : > { %v1810_v39 = vpop.eup %1809 }
 0x346   : > { %v1183_v40 = vsel %vm758_vm3, %v1810_v39, 0.0  ;;  %v1187_v41 = vpack.c.bf16 %v1810_v39, %v1810_v39 }
 0x347   : > { %1184 = vadd.xlane.f32.xlu0 %v1183_v40 }
 0x348   : > { %1660 = vmatmul.mubr.msk.bf16.vlgmr.msra.gmra.mxu0 %vm758_vm3, %v1187_v41 }
 0x383   : > { %v857_v42 = vpop.f32.mrf.mxu0 }
 0x385   : > { %v1625_v43 = vpop.f32.mrf.mxu0 }
 0x387   : > { %v860_v44 = vpop.f32.mrf.mxu0 }
 0x389   : > { %v1626_v45 = vpop.f32.mrf.mxu0 }
 0x3c0   : > { %v931_v46 = vpop.xlane.xlu1 %930 }
 0x3c4   : > { %v813_v47 = vpop.xlane.xlu1 %812 }
 0x3c5   : > { %1811 = vrcp.f32 %v813_v47 }
 0x3c6   : > { %1813 = vrcp.f32 %v931_v46 }
 0x3c8   : > { %v1058_v51 = vpop.xlane.xlu0 %1057 }
 0x3c9   : > { %1815 = vrcp.f32 %v1058_v51 }
 0x3d0   : > { %v1185_v53 = vpop.xlane.xlu0 %1184 }
 0x3d1   : > { %1817 = vrcp.f32 %v1185_v53 }
 0x3d2   : > { %v1812_v48 = vpop.eup %1811 }
 0x3d3   : > { %v863_v49 = vmul.f32 %v1812_v48, %v857_v42  ;;  %v1814_v52 = vpop.eup %1813 }
 0x3d5   : > { %v864_v50 = vpack.c.bf16 %v863_v49, %v863_v49 }
 0x3d6   : > { %v1816_v60 = vpop.eup %1815 }
 0x3d7   : > { %866 = vst.msk [vmem:[#allocation4] sm:$0xf] %vm865_vm5, %v864_v50 }
 0x3de   : > { %v1818_v7 = vpop.eup %1817 }
 0x3f8   : > { %v979_v54 = vpop.f32.mrf.mxu0 }
 0x3f9   : > { %v985_v55 = vmul.f32 %v1814_v52, %v979_v54 }
 0x3fa   : > { %v1637_v56 = vpop.f32.mrf.mxu0 }
 0x3fb   : > { %v1560_v57 = vpack.c.bf16 %v985_v55, %v985_v55 }
 0x3fc   : > { %v982_v58 = vpop.f32.mrf.mxu0 }
 0x3fd   : > { %990 = vrot.lane.b32.xlu0 %v1560_v57, %s2092_s2  ;;  %s2095_s2 = smov [#allocation16]  }
 0x3fe   : > { %v1638_v59 = vpop.f32.mrf.mxu0  ;;  %s1985_s24 = sshll.u32 %s2095_s2, 4  ;;  %s1986_s24 = int_to_ptr.vmem [resolvable:$false] %s1985_s24 }
 0x3ff   : > { %s1987_s23 = scalar_lea.vmem %s1986_s24, 256  ;;  %p1988_p9 = scmp.lt.s32.totalorder %s1364_s20, %s1986_s24 }
 0x400   : > { %v1106_v61 = vpop.f32.mrf.mxu0  ;;  %p1989_p10 = scmp.lt.s32.totalorder %s1987_s23, %s1981_s19 }
 0x401   : > { %v1112_v63 = vmul.f32 %v1816_v60, %v1106_v61 }
 0x402   : > { %v1649_v1 = vpop.f32.mrf.mxu0  ;;  %p1990_p12 = por %p1989_p10, %p1988_p9 }
 0x403   : > { %v1561_v4 = vpack.c.bf16 %v1112_v63, %v1112_v63 }
 0x404   : > { %v1109_v5 = vpop.f32.mrf.mxu0  ;;  %p1991_p6 = pnand %p1990_p12, %p1984_p0 }
 0x405   : > { %1117 = vrot.lane.b32.xlu1 %v1561_v4, %s2093_s14 }
 0x406   : > { %v1650_v6 = vpop.f32.mrf.mxu0 }
 0x408   : > { %v1233_v8 = vpop.f32.mrf.mxu0 }
 0x409   : > { %v1239_v9 = vmul.f32 %v1818_v7, %v1233_v8 }
 0x40a   : > { %v1661_v10 = vpop.f32.mrf.mxu0 }
 0x40b   : > { %v1562_v11 = vpack.c.bf16 %v1239_v9, %v1239_v9 }
 0x40c   : > { %v1236_v12 = vpop.f32.mrf.mxu0 }
 0x40d   : > { %1244 = vrot.lane.b32.xlu1 %v1562_v11, %s2094_s4 }
 0x40e   : > { %v1662_v13 = vpop.f32.mrf.mxu0 }
 0x46f   : > { %v991_v14 = vpop.permute.xlu0 %990 }
 0x470   : > { %994 = vst.msk [vmem:[#allocation4] sm:$0xf] %vm993_vm6, %v991_v14 }
 0x477   : > { %v1118_v15 = vpop.permute.xlu1 %1117 }
 0x478   : > { %1121 = vst.msk [vmem:[#allocation4] sm:$0xf] %vm1120_vm7, %v1118_v15 }
 0x47f   : > { %v1245_v0 = vpop.permute.xlu1 %1244 }
 0x480   : > { %1248 = vst.msk [vmem:[#allocation4] sm:$0xf] %vm1247_vm8, %v1245_v0 }
 0x487   : > { %v1249_v16 = vld [vmem:[#allocation4] sm:$0xf] }
 0x488   : > { %1668 = vmatmul.mubr.msk.bf16.vlgmr.msra.gmra.mxu1 %vm565_vm1, %v1249_v16 }
 0x548   : > { %v1310_v18 = vpop.f32.mrf.mxu1 }
 0x549   : > { %v1311_v19 = vadd.f32 %v1550_v17, %v1310_v18 }
 0x54a   : > { %v1669_v20 = vpop.f32.mrf.mxu1 }
 0x54b   : > { %v1316_v21 = vadd.f32 %v1311_v19, %v2356_v3 }
 0x54c   : > { %v1313_v22 = vpop.f32.mrf.mxu1 }
 0x54d   : > { %v1317_v23 = vsel %vm565_vm1, %v1316_v21, 0.0 }
 0x54e   : > { %1318 = vadd.xlane.f32.xlu0 %v1317_v23  ;;  %v1670_v24 = vpop.f32.mrf.mxu1 }
 0x5d7   : > { %v1319_v25 = vpop.xlane.xlu0 %1318 }
 0x5d8   : > { %v1321_v26 = vmul.f32 0.03125, %v1319_v25 }
 0x5da   : > { %v1322_v27 = vsub.f32 %v1316_v21, %v1321_v26 }
 0x5dc   : > { %v1323_v28 = vmul.f32 %v1322_v27, %v1322_v27 }
 0x5de   : > { %v1324_v29 = vsel %vm565_vm1, %v1323_v28, 0.0 }
 0x5df   : > { %1325 = vadd.xlane.f32.xlu1 %v1324_v29 }
 0x668   : > { %v1326_v30 = vpop.xlane.xlu1 %1325 }
 0x669   : > { %v1327_v31 = vmul.f32 0.03125, %v1326_v30 }
 0x66b   : > { %v1328_v32 = vadd.f32 1e-12, %v1327_v31 }
 0x66d   : > { %1819 = vrsqrt.f32 %v1328_v32 }
 0x67a   : > { %v1820_v3 = vpop.eup %1819 }
 0x67b   : > { %v1330_v34 = vmul.f32 %v1820_v3, %v1322_v27 }
 0x67d   : > { %v1338_v36 = vmul.f32 %v1554_v33, %v1330_v34 }
 0x67f   : > { %v1346_v37 = vadd.f32 %v1555_v35, %v1338_v36 }
 0x681   : > { %1347 = vst.msk [vmem:[%s534_s28] sm:$0xff] %vm565_vm1, %v1346_v37 }
 0x682   : > { %1994 = shalt.err (!%p1991_p6)
}
 0x683   : > { %s1995_s14 = scalar_lea.hbm %s1361_s29, 128  ;;  %s1999_s8 = scalar_lea.hbm %s2543_s12, 256 }
 0x684   : > { %p1996_p5 = scmp.ne.s32.totalorder %s1361_s29, %s1995_s14  ;;  %p2000_p4 = scmp.lt.s32.totalorder %s1361_s29, %s2543_s12 }
 0x685   : > { %p2001_p7 = scmp.lt.s32.totalorder %s1999_s8, %s1995_s14 }
 0x686   : > { %p1997_p13 = pnand %p1996_p5, %p2279_p2 }
 0x687   : > { %p2002_p1 = por %p2001_p7, %p2000_p4 }
 0x688   : > { %p1998_p11 = pneg %p1997_p13 }
 0x68a   : > { %p2003_p3 = pnand %p2002_p1, %p1998_p11 }
 0x68c   : > { %2006 = shalt.err (!%p2003_p3)
}
 0x68d   : > { %1691 = dma.vmem_to_hbm [thread:$0]  (%p2279_p2), %s1364_s20, 128, %s1361_s29, %s1349_s18  }
 0x68e PF: > { %s2544_s0 = sld [smem:[#allocation23_spill]] }
 0x68f   : > { %s2546_s26 = sld [smem:[#allocation25_spill]] }
 0x694   : > { %s1375_s27 = sand.u32 1, %s2544_s0  }
 0x695   : > { %p2547_p0 = scmp.ge.s32.totalorder %s2546_s26, 2  ;;  %s1376_s28 = scalar_lea.sflag [#allocation7], %s1375_s27 }
 0x697   : > { %p1714_p9 = pnand %p2547_p0, %p2286_p8 }
 0x699   : > { %p1715_p10 = pneg %p1714_p9 }
 0x69b   : > { %2052 = dma.done.wait (%p1715_p10), %s1376_s28, 128  }
 0x69c   : > { %2054 = vsyncadd (%p1715_p10), %s1376_s28, 4294967168  ;;  %s33_s26 = sadd.s32 1, %s2546_s26   ;;  %s2548_s17 = sld [smem:[#allocation24_spill]] }
 0x69d   : > { %p30_p12 = scmp.ge.s32.totalorder %s33_s26, 4   ;;  %s2549_s23 = sld [smem:[#allocation27_spill]] }
 0x69e   : > { %s2550_s15 = sld [smem:[#allocation26_spill]]  ;;  %s2551_s21 = smov %s2061_s22 }
 0x69f   : > { %s2553_s24 = smov %s2073_s25 }
 0x6a0   :  { %32 = sbr.rel (!%p30_p12) target bundleno = 17 (0x11), region = 147 }
 0x6a2   : > { %s2552_s22 = smov %s2548_s17 }
 0x6a4   : > { %s2554_s25 = smov %s2550_s15 }
 0x6a5   :  { %1381 = vsyncpa [#allocation6], 1 }
 0x6a6   :  { %1383 = vsyncpa [#allocation6 + $0x1], 1 }
 0x6a7   :  { %1384 = vsyncpa [#allocation9], 1 }
 0x6a8   :  { %1386 = vsyncpa [#allocation9 + $0x1], 1 }
 0x6a9   :  { %1387 = vsyncpa [#allocation12], 1 }
 0x6aa   :  { %1388 = vsyncpa [#allocation15], 1 }
 0x6ab   :  { %1389 = vsyncpa [#allocation7], 1 }
 0x6ac   :  { %1391 = vsyncpa [#allocation7 + $0x1], 1 }

</bundles_post_ra>
